<compile_context>
chip_gen: v5e
topology: v5e:2x2
jax: 0.10.0
libtpu: 0.0.40
codegen_flags: <defaults>
</compile_context>

<pallas_src>
import functools

import jax
import jax.numpy as jnp
from jax import lax
from jax.experimental import pallas as pl
from jax.experimental.pallas import tpu as pltpu

_MAX_TILE = 4096  # lanes of conv output per chunk -> (tile, 128) f32 = 2 MiB max


def _round_up(x, m):
    return (x + m - 1) // m * m


def _cdiv(a, b):
    return -(-a // b)


def _pick_spatial_tile(lp):
    """Chunk the padded-flat spatial axis into <=_MAX_TILE, 128-aligned tiles."""
    lp128 = _round_up(lp, 128)
    if lp128 <= _MAX_TILE:
        return lp128, 1
    n = _cdiv(lp128, _MAX_TILE)
    tile = _round_up(_cdiv(lp, n), 128)
    return tile, n


def _scanoma_kernel(x_ref, mask_ref, wconv_ref, wfc_ref, bfc_ref, out_ref, *,
                    tap_offsets, tile, n_chunks, inv_hw):
    """Fused conv3x3(SAME) + ReLU + global-avg-pool + linear head (one image/step).

    x_ref     : (Cin, Lp_pad)      bf16  zero-padded image, row-major flat spatial in lanes
    mask_ref  : (1, Lp_pad)        bf16  1.0 at valid output positions, else 0.0
    wconv_ref : (9*Cin+1, Cout_p)  bf16  conv weight rows (kh,kw,cin) + bias row
    wfc_ref   : (Cout_p, Ncls_p)   bf16  FC weight (lane padded)
    bfc_ref   : (1, Ncls_p)        f32   FC bias   (lane padded)
    out_ref   : (8, Ncls_p)        f32   lane-dense logits slab (row 0 used)
    """
    coutp = wconv_ref.shape[1]
    acc = jnp.zeros((8, coutp), jnp.float32)       # per-sublane partial pooled sums

    for s in range(n_chunks):                      # static unroll; all offsets static
        start = s * tile
        mask = mask_ref[:, start:start + tile]                          # (1, tile)
        pieces = [x_ref[:, start + d:start + d + tile] for d in tap_offsets]
        # (28, tile) im2col block built in VMEM only.  The appended mask row is the
        # "constant one" column carrying the conv bias; multiplying everything by
        # the mask zeroes out-of-image flat positions so ReLU(0)=0 keeps the pooled
        # sum exact.
        patches = jnp.concatenate(pieces + [mask], axis=0) * mask       # (28, tile)
        y = lax.dot_general(patches, wconv_ref[...],
                            (((0,), (0,)), ((), ())),
                            preferred_element_type=jnp.float32)         # (tile, Cout_p)
        y = jnp.maximum(y, 0.0)
        acc = acc + jnp.sum(y.reshape(tile // 8, 8, coutp), axis=0)     # vreg adds only

    pooled = jnp.sum(acc, axis=0, keepdims=True) * jnp.float32(inv_hw)  # (1, Cout_p)
    logits = jnp.dot(pooled.astype(wfc_ref.dtype), wfc_ref[...],
                     preferred_element_type=jnp.float32) + bfc_ref[...]
    out_ref[...] = jnp.broadcast_to(logits, out_ref.shape).astype(out_ref.dtype)


def scanoma_forward(x_nchw, w_conv, b_conv, w_fc, b_fc):
    """Scanoma stand-in classifier. x_nchw: (B, Cin, H, W) scaled to (-1,1)."""
    B, Cin, H, W = x_nchw.shape
    KH, KW, _, Cout = w_conv.shape
    NumClasses = w_fc.shape[-1]
    assert (KH, KW) == (3, 3)

    Hp, Wp = H + 2, W + 2
    Lp = Hp * Wp
    d_max = 2 * Wp + 2                       # largest tap lane shift
    Kdim = KH * KW * Cin                     # 27
    Krow = Kdim + 1                          # + bias/mask row
    Cout_p = _round_up(Cout, 128)
    Ncls_p = _round_up(NumClasses, 128)

    tile, n_chunks = _pick_spatial_tile(Lp)
    l_cover = tile * n_chunks
    Lp_pad = l_cover + _round_up(d_max, 128)  # halo so the last chunk's taps stay in bounds

    # --- layout glue (cheap, ~1x raw input traffic; no HBM im2col) -------------
    x_pad = jnp.pad(x_nchw.astype(jnp.bfloat16), ((0, 0), (0, 0), (1, 1), (1, 1)))
    x_flat = jnp.pad(x_pad.reshape(B, Cin, Lp), ((0, 0), (0, 0), (0, Lp_pad - Lp)))

    # Valid-output mask over padded-flat positions (also the bias "one" column).
    p = jnp.arange(Lp_pad, dtype=jnp.int32)
    mask = (((p % Wp) < W) & ((p // Wp) < H)).astype(jnp.bfloat16).reshape(1, Lp_pad)

    # Conv weight (tap-major, channel-minor) with the bias folded in as row Kdim;
    # zero-padded to 128 lanes -> dense accumulator vregs / unmasked stores.
    w_mat = jnp.zeros((Krow, Cout_p), jnp.bfloat16)
    w_mat = w_mat.at[:Kdim, :Cout].set(w_conv.reshape(Kdim, Cout).astype(jnp.bfloat16))
    w_mat = w_mat.at[Kdim, :Cout].set(b_conv.astype(jnp.bfloat16))

    w_fc_p = jnp.zeros((Cout_p, Ncls_p), jnp.bfloat16).at[:Cout, :NumClasses].set(
        w_fc.astype(jnp.bfloat16))
    b_fc_p = jnp.zeros((1, Ncls_p), jnp.float32).at[:, :NumClasses].set(
        b_fc.astype(jnp.float32))

    taps = tuple(kh * Wp + kw for kh in range(3) for kw in range(3))
    kernel = functools.partial(_scanoma_kernel, tap_offsets=taps, tile=tile,
                               n_chunks=n_chunks, inv_hw=1.0 / float(H * W))

    cost = pl.CostEstimate(
        flops=2 * B * l_cover * Krow * Cout_p + 2 * B * Cout_p * Ncls_p,
        transcendentals=0,
        bytes_accessed=(x_flat.size * 2 + mask.size * 2 + w_mat.size * 2
                        + w_fc_p.size * 2 + b_fc_p.size * 4 + B * 8 * Ncls_p * 4),
    )

    out = pl.pallas_call(
        kernel,
        out_shape=jax.ShapeDtypeStruct((B, 8, Ncls_p), jnp.float32),
        grid_spec=pltpu.PrefetchScalarGridSpec(
            num_scalar_prefetch=0,
            grid=(B,),
            in_specs=[
                pl.BlockSpec((None, Cin, Lp_pad), lambda b: (b, 0, 0)),  # image
                pl.BlockSpec((1, Lp_pad), lambda b: (0, 0)),             # mask (fetched once)
                pl.BlockSpec((Krow, Cout_p), lambda b: (0, 0)),          # conv W+bias
                pl.BlockSpec((Cout_p, Ncls_p), lambda b: (0, 0)),        # FC W
                pl.BlockSpec((1, Ncls_p), lambda b: (0, 0)),             # FC bias
            ],
            out_specs=pl.BlockSpec((None, 8, Ncls_p), lambda b: (b, 0, 0)),
        ),
        compiler_params=pltpu.CompilerParams(
            dimension_semantics=("parallel",),
            vmem_limit_bytes=32 * 1024 * 1024,   # actual use ~10 MiB; fits v7x 64 MiB
        ),
        cost_estimate=cost,
    )(x_flat, mask, w_mat, w_fc_p, b_fc_p)

    # Lane-dense (B, 8, 128) slab -> (B, NumClasses) logits.
    return out[:, 0, :NumClasses]


def _reference_forward(x_nchw, w_conv, b_conv, w_fc, b_fc):
    """Pure-JAX reference (same bf16-operand / f32-accumulate numerics)."""
    x = jnp.transpose(x_nchw, (0, 2, 3, 1)).astype(jnp.bfloat16)
    y = lax.conv_general_dilated(
        x, w_conv.astype(jnp.bfloat16),
        window_strides=(1, 1), padding="SAME",
        dimension_numbers=("NHWC", "HWIO", "NHWC"),
        preferred_element_type=jnp.float32)
    y = jnp.maximum(y + b_conv.astype(jnp.float32), 0.0)
    pooled = y.mean(axis=(1, 2))                              # (B, Cout) f32
    logits = jnp.dot(pooled.astype(jnp.bfloat16), w_fc.astype(jnp.bfloat16),
                     preferred_element_type=jnp.float32)
    return logits + b_fc.astype(jnp.float32)


if __name__ == "__main__":
    key = jax.random.PRNGKey(0)
    k_x, k_wc, k_bc, k_wf, k_bf = jax.random.split(key, 5)

    # Small shapes consistent with the module's image-classifier forward
    # (real Scanoma uses 224x224 RGB; kept small here). positive_index = 1.
    B, Cin, H, W = 2, 3, 16, 16
    Cout, NumClasses = 32, 2

    # (-1, 1)-scaled input image, NCHW like PyTorch.
    x = jax.random.uniform(k_x, (B, Cin, H, W), jnp.float32, minval=-1.0, maxval=1.0)

    # Deterministic synthetic parameters (HWIO conv weight).
    w_conv = jax.random.normal(k_wc, (3, 3, Cin, Cout), jnp.float32) * 0.1
    b_conv = jax.random.normal(k_bc, (Cout,), jnp.float32) * 0.01
    w_fc = jax.random.normal(k_wf, (Cout, NumClasses), jnp.float32) * 0.1
    b_fc = jax.random.normal(k_bf, (NumClasses,), jnp.float32) * 0.01

    logits = scanoma_forward(x, w_conv, b_conv, w_fc, b_fc)
    jax.block_until_ready(logits)

    ref = _reference_forward(x, w_conv, b_conv, w_fc, b_fc)
    assert logits.shape == (B, NumClasses)
    assert jnp.allclose(logits, ref, atol=5e-3, rtol=5e-3), (logits, ref)

    print("KERNEL_OK")
</pallas_src>

<mosaic_0001>
module attributes {stable_mosaic.version = 11 : i64} {
  func.func @_scanoma_kernel(%arg0: i32, %arg1: memref<1x3x512xbf16, #tpu.memory_space<vmem>>, %arg2: memref<1x512xbf16, #tpu.memory_space<vmem>>, %arg3: memref<28x128xbf16, #tpu.memory_space<vmem>>, %arg4: memref<128x128xbf16, #tpu.memory_space<vmem>>, %arg5: memref<1x128xf32, #tpu.memory_space<vmem>>, %arg6: memref<1x8x128xf32, #tpu.memory_space<vmem>>) attributes {dimension_semantics = [#tpu.dimension_semantics<parallel>], iteration_bounds = array<i64: 2>, scalar_prefetch = 0 : i64, scratch_operands = 0 : i64, tpu.core_type = #tpu.core_type<tc>, window_params = [{transform_indices = @transform_0, window_bounds = array<i64: 1, 3, 512>}, {pipeline_mode = #tpu.pipeline_mode<synchronous>, transform_indices = @transform_1, window_bounds = array<i64: 1, 512>}, {pipeline_mode = #tpu.pipeline_mode<synchronous>, transform_indices = @transform_2, window_bounds = array<i64: 28, 128>}, {pipeline_mode = #tpu.pipeline_mode<synchronous>, transform_indices = @transform_3, window_bounds = array<i64: 128, 128>}, {pipeline_mode = #tpu.pipeline_mode<synchronous>, transform_indices = @transform_4, window_bounds = array<i64: 1, 128>}, {transform_indices = @transform_5, window_bounds = array<i64: 1, 8, 128>}]} {
    %cst = arith.constant 0.000000e+00 : f32
    %0 = vector.broadcast %cst : f32 to vector<8x128xf32>
    %c0 = arith.constant 0 : index
    %c0_0 = arith.constant 0 : index
    %1 = vector.load %arg2[%c0, %c0_0] : memref<1x512xbf16, #tpu.memory_space<vmem>>, vector<1x384xbf16>
    %c0_1 = arith.constant 0 : index
    %c0_2 = arith.constant 0 : index
    %c0_3 = arith.constant 0 : index
    %2 = vector.load %arg1[%c0_1, %c0_2, %c0_3] : memref<1x3x512xbf16, #tpu.memory_space<vmem>>, vector<1x3x384xbf16>
    %3 = vector.shape_cast %2 : vector<1x3x384xbf16> to vector<3x384xbf16>
    %c0_4 = arith.constant 0 : index
    %c0_5 = arith.constant 0 : index
    %c1 = arith.constant 1 : index
    %4 = vector.load %arg1[%c0_4, %c0_5, %c1] : memref<1x3x512xbf16, #tpu.memory_space<vmem>>, vector<1x3x384xbf16>
    %5 = vector.shape_cast %4 : vector<1x3x384xbf16> to vector<3x384xbf16>
    %c0_6 = arith.constant 0 : index
    %c0_7 = arith.constant 0 : index
    %c2 = arith.constant 2 : index
    %6 = vector.load %arg1[%c0_6, %c0_7, %c2] : memref<1x3x512xbf16, #tpu.memory_space<vmem>>, vector<1x3x384xbf16>
    %7 = vector.shape_cast %6 : vector<1x3x384xbf16> to vector<3x384xbf16>
    %c0_8 = arith.constant 0 : index
    %c0_9 = arith.constant 0 : index
    %c18 = arith.constant 18 : index
    %8 = vector.load %arg1[%c0_8, %c0_9, %c18] : memref<1x3x512xbf16, #tpu.memory_space<vmem>>, vector<1x3x384xbf16>
    %9 = vector.shape_cast %8 : vector<1x3x384xbf16> to vector<3x384xbf16>
    %c0_10 = arith.constant 0 : index
    %c0_11 = arith.constant 0 : index
    %c19 = arith.constant 19 : index
    %10 = vector.load %arg1[%c0_10, %c0_11, %c19] : memref<1x3x512xbf16, #tpu.memory_space<vmem>>, vector<1x3x384xbf16>
    %11 = vector.shape_cast %10 : vector<1x3x384xbf16> to vector<3x384xbf16>
    %c0_12 = arith.constant 0 : index
    %c0_13 = arith.constant 0 : index
    %c20 = arith.constant 20 : index
    %12 = vector.load %arg1[%c0_12, %c0_13, %c20] : memref<1x3x512xbf16, #tpu.memory_space<vmem>>, vector<1x3x384xbf16>
    %13 = vector.shape_cast %12 : vector<1x3x384xbf16> to vector<3x384xbf16>
    %c0_14 = arith.constant 0 : index
    %c0_15 = arith.constant 0 : index
    %c36 = arith.constant 36 : index
    %14 = vector.load %arg1[%c0_14, %c0_15, %c36] : memref<1x3x512xbf16, #tpu.memory_space<vmem>>, vector<1x3x384xbf16>
    %15 = vector.shape_cast %14 : vector<1x3x384xbf16> to vector<3x384xbf16>
    %c0_16 = arith.constant 0 : index
    %c0_17 = arith.constant 0 : index
    %c37 = arith.constant 37 : index
    %16 = vector.load %arg1[%c0_16, %c0_17, %c37] : memref<1x3x512xbf16, #tpu.memory_space<vmem>>, vector<1x3x384xbf16>
    %17 = vector.shape_cast %16 : vector<1x3x384xbf16> to vector<3x384xbf16>
    %c0_18 = arith.constant 0 : index
    %c0_19 = arith.constant 0 : index
    %c38 = arith.constant 38 : index
    %18 = vector.load %arg1[%c0_18, %c0_19, %c38] : memref<1x3x512xbf16, #tpu.memory_space<vmem>>, vector<1x3x384xbf16>
    %19 = vector.shape_cast %18 : vector<1x3x384xbf16> to vector<3x384xbf16>
    %20 = tpu.concatenate %3, %5, %7, %9, %11, %13, %15, %17, %19, %1 in 0 : vector<3x384xbf16>, vector<3x384xbf16>, vector<3x384xbf16>, vector<3x384xbf16>, vector<3x384xbf16>, vector<3x384xbf16>, vector<3x384xbf16>, vector<3x384xbf16>, vector<3x384xbf16>, vector<1x384xbf16> -> vector<28x384xbf16>
    %21 = vector.broadcast %1 : vector<1x384xbf16> to vector<28x384xbf16>
    %22 = arith.mulf %20, %21 : vector<28x384xbf16>
    %c0_20 = arith.constant 0 : index
    %c0_21 = arith.constant 0 : index
    %23 = vector.load %arg3[%c0_20, %c0_21] : memref<28x128xbf16, #tpu.memory_space<vmem>>, vector<28x128xbf16>
    %cst_22 = arith.constant dense<0.000000e+00> : vector<384x128xf32>
    %24 = tpu.matmul %22, %23, %cst_22 {dimension_numbers = #tpu.dot_dimension_numbers<[0], [0], [1], [1], [0, 1, 1, 1], [], []>} : vector<28x384xbf16>, vector<28x128xbf16>, vector<384x128xf32> -> vector<384x128xf32>
    %cst_23 = arith.constant 0.000000e+00 : f32
    %25 = vector.broadcast %cst_23 : f32 to vector<384x128xf32>
    %26 = arith.maximumf %24, %25 : vector<384x128xf32>
    %27 = vector.shape_cast %26 : vector<384x128xf32> to vector<48x8x128xf32>
    %cst_24 = arith.constant dense<0.000000e+00> : vector<8x128xf32>
    %28 = vector.multi_reduction <add>, %27, %cst_24 [0] : vector<48x8x128xf32> to vector<8x128xf32>
    %29 = arith.addf %0, %28 : vector<8x128xf32>
    %cst_25 = arith.constant dense<0.000000e+00> : vector<128xf32>
    %30 = vector.multi_reduction <add>, %29, %cst_25 [0] : vector<8x128xf32> to vector<128xf32>
    %31 = vector.shape_cast %30 : vector<128xf32> to vector<1x128xf32>
    %cst_26 = arith.constant 3.906250e-03 : f32
    %32 = vector.broadcast %cst_26 : f32 to vector<1x128xf32>
    %33 = arith.mulf %31, %32 : vector<1x128xf32>
    %34 = arith.truncf %33 : vector<1x128xf32> to vector<1x128xbf16>
    %c0_27 = arith.constant 0 : index
    %c0_28 = arith.constant 0 : index
    %35 = vector.load %arg4[%c0_27, %c0_28] : memref<128x128xbf16, #tpu.memory_space<vmem>>, vector<128x128xbf16>
    %cst_29 = arith.constant dense<0.000000e+00> : vector<1x128xf32>
    %36 = tpu.matmul %34, %35, %cst_29 {dimension_numbers = #tpu.dot_dimension_numbers<[1], [0], [0], [1], [0, 0, 1, 1], [], []>} : vector<1x128xbf16>, vector<128x128xbf16>, vector<1x128xf32> -> vector<1x128xf32>
    %c0_30 = arith.constant 0 : index
    %c0_31 = arith.constant 0 : index
    %37 = vector.load %arg5[%c0_30, %c0_31] : memref<1x128xf32, #tpu.memory_space<vmem>>, vector<1x128xf32>
    %38 = arith.addf %36, %37 : vector<1x128xf32>
    %39 = vector.shape_cast %38 : vector<1x128xf32> to vector<1x128xf32>
    %40 = vector.broadcast %39 : vector<1x128xf32> to vector<8x128xf32>
    %c0_32 = arith.constant 0 : index
    %c0_33 = arith.constant 0 : index
    %c0_34 = arith.constant 0 : index
    %41 = vector.load %arg6[%c0_32, %c0_33, %c0_34] : memref<1x8x128xf32, #tpu.memory_space<vmem>>, vector<1x8x128xf32>
    %42 = vector.shape_cast %41 : vector<1x8x128xf32> to vector<8x128xf32>
    %43 = vector.shape_cast %40 : vector<8x128xf32> to vector<1x8x128xf32>
    tpu.vector_store %arg6[%c0_32, %c0_33, %c0_34], %43 {strides = array<i32>} : memref<1x8x128xf32, #tpu.memory_space<vmem>>, vector<1x8x128xf32>,
    return
  }
  func.func @transform_0(%arg0: i32) -> (i32, i32, i32) {
    %c0_i32 = arith.constant 0 : i32
    %c0_i32_0 = arith.constant 0 : i32
    %c0_i32_1 = arith.constant 0 : i32
    return %arg0, %c0_i32, %c0_i32_0 : i32, i32, i32
  }
  func.func @transform_1(%arg0: i32) -> (i32, i32) {
    %c0_i32 = arith.constant 0 : i32
    %c0_i32_0 = arith.constant 0 : i32
    %c0_i32_1 = arith.constant 0 : i32
    return %c0_i32, %c0_i32_0 : i32, i32
  }
  func.func @transform_2(%arg0: i32) -> (i32, i32) {
    %c0_i32 = arith.constant 0 : i32
    %c0_i32_0 = arith.constant 0 : i32
    %c0_i32_1 = arith.constant 0 : i32
    return %c0_i32, %c0_i32_0 : i32, i32
  }
  func.func @transform_3(%arg0: i32) -> (i32, i32) {
    %c0_i32 = arith.constant 0 : i32
    %c0_i32_0 = arith.constant 0 : i32
    %c0_i32_1 = arith.constant 0 : i32
    return %c0_i32, %c0_i32_0 : i32, i32
  }
  func.func @transform_4(%arg0: i32) -> (i32, i32) {
    %c0_i32 = arith.constant 0 : i32
    %c0_i32_0 = arith.constant 0 : i32
    %c0_i32_1 = arith.constant 0 : i32
    return %c0_i32, %c0_i32_0 : i32, i32
  }
  func.func @transform_5(%arg0: i32) -> (i32, i32, i32) {
    %c0_i32 = arith.constant 0 : i32
    %c0_i32_0 = arith.constant 0 : i32
    %c0_i32_1 = arith.constant 0 : i32
    return %arg0, %c0_i32, %c0_i32_0 : i32, i32, i32
  }
}

</mosaic_0001>

<bundles_post_ra>
// kernel: tpu_custom_call.1
= control target key start
LH: loop header
LB: loop body
LE: loop exit
PB: predicated region body
PF: predicated region fallthrough
CT: control target
= control target key end

     0   :  { %10 = vsyncpa [#allocation3], 0  ;;  %s1941_s0 = inlined_call_operand.vmem [shape: bf16[2,3,512], index: 0, kind: input, shape index: {}]   ;;  %s1942_s1 = inlined_call_operand.vmem [shape: bf16[1,512], index: 1, kind: input, shape index: {}]   ;;  %s1943_s2 = inlined_call_operand.vmem [shape: bf16[28,128], index: 2, kind: input, shape index: {}]   ;;  %s1944_s3 = inlined_call_operand.hbm [shape: bf16[128,128], index: 3, kind: input, shape index: {}]   ;;  %s1945_s4 = inlined_call_operand.vmem [shape: f32[1,128], index: 4, kind: input, shape index: {}]   ;;  %s1946_s5 = inlined_call_operand.hbm [shape: f32[2,8,128], index: 5, kind: output, shape index: {}]  }
   0x1   :  { %11 = vsyncpa [#allocation4], 0 }
   0x2   :  { %13 = vsyncpa [#allocation4 + $0x1], 0  ;;  %s1521_s18 = smov 0   ;;  %s1523_s19 = smov 0  }
   0x3   :  { %s1525_s20 = smov 0   ;;  %s1527_s21 = smov 0  }
   0x4 LB: > { %s1542_s22 = sadd.s32 4294967295, %s1478_s21   ;;  %s1222_s23 = sadd.s32 4294967294, %s1478_s21   ;;  %s1478_s21 = sphi %s1527_s21, %s1966_s21   ;;  %s1474_s20 = sphi %s1525_s20, %s1965_s20   ;;  %s1470_s19 = sphi %s1523_s19, %s1964_s19   ;;  %s1466_s18 = sphi %s1521_s18, %s1963_s18  }
   0x5   : > { %s1546_s24 = sadd.s32 1, %s1478_s21   ;;  %s136_s25 = sadd.s32 1, %s1474_s20 }
   0x6   : > { %s133_s26 = ssub.s32 %s1478_s21, %s1546_s24  ;;  %p146_p0 = scmp.ne.s32.totalorder %s1474_s20, %s1470_s19 }
   0x7   : > { %p134_p1 = scmp.eq.s32.totalorder %s133_s26, 0  ;;  %p147_p2 = scmp.eq.s32.totalorder %s1542_s22, 1 }
   0x8   : > { %p152_p3 = scmp.ne.s32.totalorder %s1470_s19, %s1466_s18  ;;  %p153_p4 = scmp.eq.s32.totalorder %s1222_s23, 1 }
   0x9   : > { %s1557_s27 = scalar_select %p134_p1, %s1474_s20, %s136_s25  }
   0xa   : > { %p1559_p5 = por %p147_p2, %p146_p0  ;;  %p1563_p6 = por %p153_p4, %p152_p3 }
   0xb   : > { %p1223_p7 = scmp.ge.s32.totalorder %s1478_s21, 1  ;;  %p160_p8 = scmp.lt.s32.totalorder %s1478_s21, 3 }
   0xc   : > { %p1330_p9 = scmp.eq.s32.totalorder %s1542_s22, 0  ;;  %s177_s7 = sshll.u32 %s1944_s3, 4  ;;  %s178_s7 = int_to_ptr.hbm [resolvable:$true] %s177_s7 }
   0xd   : > { %p161_p10 = pnand %p1223_p7, %p160_p8  ;;  %s1480_s8 = smov [#allocation2]  }
   0xe   : > { %s179_s9 = sshll.u32 %s1480_s8, 4  ;;  %s1481_s10 = smov 64   ;;  %s180_s9 = int_to_ptr.vmem [resolvable:$true] %s179_s9 }
   0xf   : > { %p1322_p11 = pneg %p161_p10  ;;  %s1482_s11 = smov 4  }
  0x10   : > { %206 = sbr.rel (%p161_p10) target bundleno = 892 (0x37c), region = 40 }
  0x11   : > { %p1323_p12 = pnand %p1330_p9, %p1322_p11 }
  0x13   : > { %1325 = dma.hbm_to_vmem [thread:$0]  (!%p1323_p12), %s178_s7, 1024, %s180_s9, [#allocation3], %s1481_s10, %s1481_s10, %s1482_s11  }
  0x15   : > { %1457 = dma.done.wait (%p1330_p9), [#allocation3], 1024  }
  0x16   : > { %1459 = vsyncadd (%p1330_p9), [#allocation3], 4294966272  ;;  %p235_p13 = scmp.lt.s32.totalorder %s1542_s22, 1  ;;  %s1483_s17 = smov 127   ;;  %vm294_vm0 = vcmask 1039360   ;;  %vm563_vm1 = vcmask 1041408  }
  0x17   : > { %s1484_s23 = smov 126   ;;  %s1485_s25 = smov 110   ;;  %vm564_vm2 = vsmask.f32 1280  ;;  %vm322_vm3 = vcmask 1031168   ;;  %vm1948_vm5 = vcmask 900096  }
  0x18   : > { %s236_s12 = scalar_select %p235_p13, %s1542_s22, 1  ;;  %vm1677_vm4 = vmand %vm563_vm1, %vm564_vm2  ;;  %vm569_vm6 = vcmask 1042432   ;;  %vm582_vm7 = vcmask 1044480   ;;  %vm583_vm8 = vsmask.f32 4352  ;;  %vm1947_vm9 = vcmask 891904  }
  0x19   : > { %s1486_s26 = smov 109   ;;  %s1487_s30 = smov 108   ;;  %vm601_vm10 = vcmask 1047552   ;;  %vm602_vm11 = vsmask.f32 7424  ;;  %vm1695_vm12 = vmand %vm582_vm7, %vm583_vm8  ;;  %vm588_vm13 = vcmask 1045504  }
  0x1a   : > { %s1299_s13 = sshll.u32 %s236_s12, 3  ;;  %s1488_s6 = smov 92   ;;  %vm441_vm14 = vcmask 883712   ;;  %vm1709_vm15 = vmand %vm601_vm10, %vm602_vm11  ;;  %vm472_vm1 = vcmask 752640   ;;  %vm517_vm2 = vcmask 744448   ;;  %vm607_vm8 = vcmask 1040384  }
  0x1b   : > { %s239_s16 = scalar_lea.vmem %s1941_s0, %s1299_s13  ;;  %s1489_s7 = smov 91   ;;  %vm621_vm7 = vsmask.f32 2304  ;;  %vm640_vm10 = vsmask.f32 5376 }
  0x1c   : > { %v242_v0 = vld [vmem:[%s239_s16] sm:$0x3f]  ;;  %s1490_s8 = smov 90   ;;  %vm1747_vm11 = vmand %vm569_vm6, %vm621_vm7 }
  0x1d   : > { %245 = vst [vmem:[#allocation1] ss:$4 sm:$0xff] %v242_v0  ;;  %v1584_v1 = vld [vmem:[%s239_s16] sm:$0xff]  ;;  %vm1763_vm7 = vmand %vm588_vm13, %vm640_vm10  ;;  %s1432_s16 = scalar_lea.hbm %s1946_s5, 16 }
  0x24   : > { %v1586_v2 = vld.sshfl [vmem:[#allocation1] sm:$0xff pattern:$0x73625140]  ;;  %v1588_v3 = vld.sshfl [vmem:[#allocation1 + $0x8] sm:$0xff pattern:$0x73625140] }
  0x25   : > { %v1590_v4 = vld.sshfl [vmem:[#allocation1 + $0x10] sm:$0xff pattern:$0x73625140] }
  0x26   : > { %253 = vst [vmem:[#allocation1] ss:$4 sm:$0xff] %v1584_v1 }
  0x2d   : > { %v256_v5 = vld.sshfl [vmem:[#allocation1 + $0x10] sm:$0xff pattern:$0x73625140]  ;;  %v254_v6 = vld.sshfl [vmem:[#allocation1] sm:$0xff pattern:$0x73625140] }
  0x2e   : > { %v272_v7 = vshrl.u32 %v256_v5, 16  ;;  %v275_v8 = vshll.u32 %v256_v5, 16  ;;  %v258_v9 = vshrl.u32 %v254_v6, 16  ;;  %v261_v10 = vshll.u32 %v254_v6, 16 }
  0x2f   : > { %v255_v11 = vld.sshfl [vmem:[#allocation1 + $0x8] sm:$0xff pattern:$0x73625140]  ;;  %v1593_v12 = vld.sshfl [vmem:[#allocation1 + $0x18] sm:$0xff pattern:$0x73625140] }
  0x30   : > { %v274_v13 = vrot.slane %v272_v7, 6  ;;  %v277_v14 = vrot.slane %v275_v8, 7  ;;  %v260_v15 = vrot.slane %v258_v9, 6  ;;  %v263_v16 = vrot.slane %v261_v10, 7  ;;  %301 = vst [vmem:[#allocation1] ss:$4 sm:$0xff] %v1584_v1 }
  0x31   : > { %v265_v17 = vshrl.u32 %v255_v11, 16  ;;  %v268_v18 = vshll.u32 %v255_v11, 16 }
  0x32   : > { %v278_v19 = vor.u32 %v277_v14, %v274_v13  ;;  %v264_v20 = vor.u32 %v263_v16, %v260_v15 }
  0x33   : > { %v267_v21 = vrot.slane %v265_v17, 6  ;;  %v270_v22 = vrot.slane %v268_v18, 7 }
  0x34   : > { %290 = vrot.lane.b32.xlu1 %v278_v19, %s1483_s17  ;;  %286 = vrot.lane.b32.xlu0 %v264_v20, %s1483_s17 }
  0x35   : > { %v271_v27 = vor.u32 %v270_v22, %v267_v21 }
  0x37   : > { %v304_v23 = vld.sshfl [vmem:[#allocation1 + $0x8] sm:$0xff pattern:$0x73625140]  ;;  %v1598_v24 = vld.sshfl [vmem:[#allocation1 + $0x18] sm:$0xff pattern:$0x73625140] }
  0x38   : > { %v311_v25 = vrot.slane %v304_v23, 5  ;;  %v302_v26 = vld.sshfl [vmem:[#allocation1] sm:$0xff pattern:$0x73625140] }
  0x39   : > { %v310_v28 = vrot.slane %v302_v26, 5  ;;  %v306_v29 = vld.sshfl [vmem:[#allocation1 + $0x10] sm:$0xff pattern:$0x73625140] }
  0x3a   : > { %316 = vrot.lane.b32.xlu2 %v311_v25, %s1484_s23  ;;  %326 = vst [vmem:[#allocation1] ss:$4 sm:$0xff] %v1584_v1  ;;  %v312_v30 = vrot.slane %v306_v29, 5 }
  0x3c   : > { %314 = vrot.lane.b32.xlu1 %v310_v28, %s1484_s23  ;;  %288 = vrot.lane.b32.xlu0 %v271_v27, %s1483_s17 }
  0x41   : > { %v327_v31 = vld.sshfl [vmem:[#allocation1] sm:$0xff pattern:$0x73625140]  ;;  %v328_v32 = vld.sshfl [vmem:[#allocation1 + $0x8] sm:$0xff pattern:$0x73625140] }
  0x42   : > { %318 = vrot.lane.b32.xlu2 %v312_v30, %s1484_s23  ;;  %v329_v33 = vld.sshfl [vmem:[#allocation1 + $0x10] sm:$0xff pattern:$0x73625140]  ;;  %v1605_v34 = vld.sshfl [vmem:[#allocation1 + $0x18] sm:$0xff pattern:$0x73625140] }
  0x43   : > { %375 = vst [vmem:[#allocation1 + $0x3] ss:$4 sm:$0xff] %v1584_v1  ;;  %v338_v35 = vshrl.u32 %v328_v32, 16  ;;  %v341_v36 = vshll.u32 %v328_v32, 16  ;;  %v331_v37 = vshrl.u32 %v327_v31, 16  ;;  %v334_v38 = vshll.u32 %v327_v31, 16 }
  0x44   : > { %v345_v39 = vshrl.u32 %v329_v33, 16  ;;  %v348_v40 = vshll.u32 %v329_v33, 16 }
  0x45   : > { %v340_v41 = vrot.slane %v338_v35, 3  ;;  %v343_v42 = vrot.slane %v341_v36, 4  ;;  %v333_v43 = vrot.slane %v331_v37, 3  ;;  %v336_v44 = vrot.slane %v334_v38, 4 }
  0x46   : > { %v347_v45 = vrot.slane %v345_v39, 3  ;;  %v350_v46 = vrot.slane %v348_v40, 4  ;;  %v279_v40 = vshrl.u32 %v1593_v12, 16 }
  0x47   : > { %v344_v47 = vor.u32 %v343_v42, %v340_v41  ;;  %v337_v48 = vor.u32 %v336_v44, %v333_v43  ;;  %v282_v41 = vshll.u32 %v1593_v12, 16 }
  0x48   : > { %v351_v49 = vor.u32 %v350_v46, %v347_v45  ;;  %v352_v46 = vshrl.u32 %v1605_v34, 16 }
  0x49   : > { %361 = vrot.lane.b32.xlu1 %v344_v47, %s1485_s25  ;;  %359 = vrot.lane.b32.xlu0 %v337_v48, %s1485_s25  ;;  %v284_v43 = vrot.slane %v282_v41, 7  ;;  %v355_v48 = vshll.u32 %v1605_v34, 16 }
  0x4a   : > { %v1610_v50 = vld.sshfl [vmem:[#allocation1 + $0x18] sm:$0xff pattern:$0x73625140]  ;;  %363 = vrot.lane.b32.xlu2 %v351_v49, %s1485_s25  ;;  %v378_v51 = vld.sshfl [vmem:[#allocation1 + $0x8] sm:$0xff pattern:$0x73625140] }
  0x4b   : > { %v376_v52 = vld.sshfl [vmem:[#allocation1] sm:$0xff pattern:$0x73625140]  ;;  %v380_v53 = vld.sshfl [vmem:[#allocation1 + $0x10] sm:$0xff pattern:$0x73625140] }
  0x4c   : > { %396 = vst [vmem:[#allocation1] ss:$4 sm:$0xff] %v1584_v1  ;;  %v354_v12 = vrot.slane %v352_v46, 3  ;;  %v357_v49 = vrot.slane %v355_v48, 4 }
  0x51   : > { %386 = vrot.lane.b32.xlu1 %v378_v51, %s1486_s26  ;;  %384 = vrot.lane.b32.xlu0 %v376_v52, %s1486_s26  ;;  %v241_v52 = vld [vmem:[%s1942_s1] sm:$0x7] }
  0x52   : > { %388 = vrot.lane.b32.xlu2 %v380_v53, %s1486_s26  ;;  %v313_v53 = vrot.slane %v1598_v24, 5 }
  0x53   : > { %v397_v54 = vld.sshfl [vmem:[#allocation1] sm:$0xff pattern:$0x73625140]  ;;  %v398_v55 = vld.sshfl [vmem:[#allocation1 + $0x8] sm:$0xff pattern:$0x73625140] }
  0x54   : > { %v399_v56 = vld.sshfl [vmem:[#allocation1 + $0x10] sm:$0xff pattern:$0x73625140]  ;;  %v1617_v57 = vld.sshfl [vmem:[#allocation1 + $0x18] sm:$0xff pattern:$0x73625140] }
  0x55   : > { %451 = vst [vmem:[#allocation1] ss:$4 sm:$0xff] %v1584_v1  ;;  %v407_v58 = vshll.u32 %v399_v56, 16  ;;  %v401_v59 = vshll.u32 %v397_v54, 16  ;;  %v404_v60 = vshll.u32 %v398_v55, 16  ;;  %v413_v61 = vshrl.u32 %v397_v54, 16 }
  0x56   : > { %v419_v7 = vshrl.u32 %v399_v56, 16  ;;  %v416_v8 = vshrl.u32 %v398_v55, 16  ;;  %v358_v54 = vor.u32 %v357_v49, %v354_v12  ;;  %v410_v34 = vshll.u32 %v1617_v57, 16 }
  0x57   : > { %v409_v62 = vrot.slane %v407_v58, 1  ;;  %v403_v63 = vrot.slane %v401_v59, 1  ;;  %v406_v0 = vrot.slane %v404_v60, 1  ;;  %v422_v56 = vshrl.u32 %v1617_v57, 16 }
  0x58   : > { %v412_v55 = vrot.slane %v410_v34, 1 }
  0x59   : > { %429 = vrot.lane.b32.xlu1 %v409_v62, %s1487_s30  ;;  %v1377_v5 = vpack.i.bf16 %v406_v0, %v403_v63  ;;  %v415_v6 = vor.u32 %v413_v61, %v403_v63  ;;  %v421_v11 = vor.u32 %v419_v7, %v409_v62  ;;  %v418_v15 = vor.u32 %v416_v8, %v406_v0 }
  0x5a   : > { %v424_v58 = vor.u32 %v422_v56, %v412_v55 }
  0x5b   : > { %1378 = vrot.lane.b32.xlu0 %v1377_v5, %s1487_s30  ;;  %433 = vrot.lane.b32.xlu2 %v415_v6, %s1487_s30 }
  0x5c   : > { %v1623_v9 = vld.sshfl [vmem:[#allocation1 + $0x18] sm:$0xff pattern:$0x73625140]  ;;  %v452_v10 = vld.sshfl [vmem:[#allocation1] sm:$0xff pattern:$0x73625140] }
  0x5d   : > { %v456_v13 = vld.sshfl [vmem:[#allocation1 + $0x10] sm:$0xff pattern:$0x73625140]  ;;  %v454_v14 = vld.sshfl [vmem:[#allocation1 + $0x8] sm:$0xff pattern:$0x73625140] }
  0x5e   : > { %v460_v16 = vrot.slane %v452_v10, 7  ;;  %476 = vst [vmem:[#allocation1] ss:$4 sm:$0xff] %v1584_v1  ;;  %v462_v17 = vrot.slane %v456_v13, 7  ;;  %v461_v18 = vrot.slane %v454_v14, 7  ;;  %v463_v24 = vrot.slane %v1623_v9, 7 }
  0x61   : > { %437 = vrot.lane.b32.xlu1 %v421_v11, %s1487_s30 }
  0x63   : > { %435 = vrot.lane.b32.xlu0 %v418_v15, %s1487_s30  ;;  %464 = vrot.lane.b32.xlu2 %v460_v16, %s1488_s6 }
  0x65   : > { %v477_v19 = vld.sshfl [vmem:[#allocation1] sm:$0xff pattern:$0x73625140]  ;;  %v479_v20 = vld.sshfl [vmem:[#allocation1 + $0x10] sm:$0xff pattern:$0x73625140] }
  0x66   : > { %v481_v21 = vshrl.u32 %v477_v19, 16  ;;  %v484_v22 = vshll.u32 %v477_v19, 16  ;;  %v495_v23 = vshrl.u32 %v479_v20, 16  ;;  %v498_v25 = vshll.u32 %v479_v20, 16 }
  0x67   : > { %v478_v26 = vld.sshfl [vmem:[#allocation1 + $0x8] sm:$0xff pattern:$0x73625140]  ;;  %v480_v27 = vld.sshfl [vmem:[#allocation1 + $0x18] sm:$0xff pattern:$0x73625140] }
  0x68   : > { %v483_v28 = vrot.slane %v481_v21, 5  ;;  %v486_v29 = vrot.slane %v484_v22, 6  ;;  %v497_v30 = vrot.slane %v495_v23, 5  ;;  %v500_v31 = vrot.slane %v498_v25, 6  ;;  %525 = vst [vmem:[#allocation1 + $0x2] ss:$4 sm:$0xff] %v1584_v1 }
  0x69   : > { %468 = vrot.lane.b32.xlu1 %v462_v17, %s1488_s6  ;;  %v488_v32 = vshrl.u32 %v478_v26, 16  ;;  %v491_v33 = vshll.u32 %v478_v26, 16  ;;  %v281_v1 = vrot.slane %v279_v40, 6  ;;  %v502_v59 = vshrl.u32 %v480_v27, 16 }
  0x6a   : > { %v487_v35 = vor.u32 %v486_v29, %v483_v28  ;;  %v501_v38 = vor.u32 %v500_v31, %v497_v30  ;;  %v505_v60 = vshll.u32 %v480_v27, 16 }
  0x6b   : > { %466 = vrot.lane.b32.xlu0 %v461_v18, %s1488_s6  ;;  %v490_v36 = vrot.slane %v488_v32, 5  ;;  %v493_v37 = vrot.slane %v491_v33, 6  ;;  %v285_v47 = vor.u32 %v284_v43, %v281_v1  ;;  %v504_v61 = vrot.slane %v502_v59, 5 }
  0x6c   : > { %509 = vrot.lane.b32.xlu2 %v487_v35, %s1489_s7  ;;  %v507_v62 = vrot.slane %v505_v60, 6 }
  0x6d   : > { %v494_v39 = vor.u32 %v493_v37, %v490_v36 }
  0x6e   : > { %v508_v0 = vor.u32 %v507_v62, %v504_v61 }
  0x6f   : > { %v526_v42 = vld.sshfl [vmem:[#allocation1] sm:$0xff pattern:$0x73625140]  ;;  %v530_v44 = vld.sshfl [vmem:[#allocation1 + $0x10] sm:$0xff pattern:$0x73625140] }
  0x70   : > { %v528_v45 = vld.sshfl [vmem:[#allocation1 + $0x8] sm:$0xff pattern:$0x73625140]  ;;  %v532_v51 = vld.sshfl [vmem:[#allocation1 + $0x18] sm:$0xff pattern:$0x73625140] }
  0x71   : > { %513 = vrot.lane.b32.xlu1 %v501_v38, %s1489_s7  ;;  %547 = vst [vmem:[#allocation1] ss:$9 sm:$0xff] %v241_v52 }
  0x73   : > { %511 = vrot.lane.b32.xlu0 %v494_v39, %s1489_s7 }
  0x74   : > { %534 = vrot.lane.b32.xlu2 %v526_v42, %s1490_s8 }
  0x78   : > { %v1661_v57 = vld [vmem:[#allocation1] sm:$0xff]  ;;  %v1663_v5 = vld [vmem:[#allocation1 + $0x9] sm:$0xff]  ;;  %v1665_v6 = vld [vmem:[#allocation1 + $0x12] sm:$0xff] }
  0x79   : > { %538 = vrot.lane.b32.xlu1 %v530_v44, %s1490_s8  ;;  %645 = vst [vmem:[#allocation1] ss:$9 sm:$0xff] %v241_v52 }
  0x7b   : > { %536 = vrot.lane.b32.xlu0 %v528_v45, %s1490_s8 }
  0x7c   : > { %292 = vrot.lane.b32.xlu2 %v285_v47, %s1483_s17  ;;  %s232_s17 = sand.u32 1, %s1470_s19  }
  0x7d   : > { %s1136_s12 = scalar_lea.sflag [#allocation4], %s232_s17 }
  0x80   : > { %v646_v19 = vld [vmem:[#allocation1] sm:$0xff]  ;;  %v647_v20 = vld [vmem:[#allocation1 + $0x9] sm:$0xff] }
  0x81   : > { %v649_v22 = vpack.i.b16 %v646_v19, %v646_v19  ;;  %v652_v23 = vpack.i.b16 %v647_v20, %v647_v20  ;;  %v551_v19 = vshll.u32 %v1661_v57, 16  ;;  %v554_v20 = vshll.u32 %v1663_v5, 16 }
  0x83   : > { %320 = vrot.lane.b32.xlu0 %v313_v53, %s1484_s23  ;;  %v651_v33 = vperm.slane %v649_v22, 0  ;;  %v654_v35 = vperm.slane %v652_v23, 0  ;;  %s1228_s23 = sshll.u32 %s232_s17, 3 }
  0x84   : > { %365 = vrot.lane.b32.xlu2 %v358_v54, %s1485_s25  ;;  %s1296_s25 = sshll.u32 %s1542_s22, 3  ;;  %s234_s9 = scalar_lea.vmem [#allocation5], %s1228_s23 }
  0x85   : > { %v1717_v46 = vunpack.c.l.bf16 %v651_v33  ;;  %v1719_v47 = vunpack.c.l.bf16 %v654_v35  ;;  %s1148_s10 = sshll.u32 %s234_s9, 4  ;;  %s1149_s10 = int_to_ptr.vmem [resolvable:$true] %s1148_s10 }
  0x8b   : > { %390 = vrot.lane.b32.xlu0 %v1610_v50, %s1486_s26 }
  0x8c   : > { %431 = vrot.lane.b32.xlu2 %v412_v55, %s1487_s30 }
  0x93   : > { %439 = vrot.lane.b32.xlu0 %v424_v58, %s1487_s30 }
  0x94   : > { %v317_v63 = vpop.permute.xlu2 %316  ;;  %470 = vrot.lane.b32.xlu2 %v463_v24, %s1488_s6  ;;  %s1146_s6 = scalar_lea.hbm %s1946_s5, %s1296_s25 }
  0x95   : > { %s1150_s11 = sshll.u32 %s1146_s6, 4  ;;  %s1151_s11 = int_to_ptr.hbm [resolvable:$true] %s1150_s11 }
  0x96   : > { %s1426_s22 = sshra.s32 %s1151_s11, 4  ;;  %s1427_s22 = int_to_ptr.hbm [resolvable:$true] %s1426_s22 }
  0x97   : > { %s1428_s13 = scalar_lea.hbm %s1427_s22, 8  ;;  %p1433_p3 = scmp.lt.s32.totalorder %s1427_s22, %s1946_s5 }
  0x98   : > { %p1429_p0 = scmp.ne.s32.totalorder %s1427_s22, %s1428_s13  ;;  %p1434_p4 = scmp.lt.s32.totalorder %s1432_s16, %s1428_s13 }
  0x9a   : > { %p1430_p1 = pnand %p1429_p0, %p1559_p5  ;;  %p1435_p7 = por %p1434_p4, %p1433_p3 }
  0x9b   : > { %515 = vrot.lane.b32.xlu0 %v508_v0, %s1489_s7 }
  0x9c   : > { %540 = vrot.lane.b32.xlu2 %v532_v51, %s1490_s8  ;;  %v1659_v50 = vpop.permute.xlu2 %318  ;;  %p1431_p2 = pneg %p1430_p1 }
  0x9d   : > { %v324_v28 = vsel %vm322_vm3, %v317_v63, %v1659_v50 }
  0x9e   : > { %p1436_p8 = pnand %p1435_p7, %p1431_p2 }
  0xa4   : > { %v1669_v9 = vpop.permute.xlu2 %363 }
  0xa6   : > { %v1667_v7 = vpop.permute.xlu1 %290  ;;  %v287_v8 = vpop.permute.xlu0 %286 }
  0xac   : > { %v1671_v13 = vpop.permute.xlu2 %388 }
  0xae   : > { %v315_v10 = vpop.permute.xlu1 %314  ;;  %v289_v11 = vpop.permute.xlu0 %288 }
  0xaf   : > { %v295_v26 = vsel %vm294_vm0, %v287_v8, %v289_v11  ;;  %v296_v27 = vsel %vm294_vm0, %v289_v11, %v1667_v7  ;;  %v323_v29 = vsel %vm322_vm3, %v315_v10, %v317_v63 }
  0xb0   : > { %v566_v30 = vsel %vm1677_vm4, %v1586_v2, %v295_v26  ;;  %v567_v31 = vsel %vm1677_vm4, %v1588_v3, %v296_v27 }
  0xb1   : > { %v576_v40 = vsel %vm569_vm6, %v567_v31, %v324_v28  ;;  %v572_v41 = vsel %vm569_vm6, %v566_v30, %v323_v29  ;;  %v553_v29 = vrot.slane %v551_v19, 3  ;;  %v556_v30 = vrot.slane %v554_v20, 3 }
  0xb5   : > { %v1673_v16 = vpop.permute.xlu2 %433 }
  0xbb   : > { %v362_v14 = vpop.permute.xlu1 %361  ;;  %v360_v15 = vpop.permute.xlu0 %359 }
  0xbc   : > { %v369_v37 = vsel %vm1948_vm5, %v362_v14, %v1669_v9  ;;  %v368_v38 = vsel %vm1948_vm5, %v360_v15, %v362_v14  ;;  %vm626_vm5 = vcmask 1043456  }
  0xbd   : > { %v1675_v21 = vpop.permute.xlu2 %464  ;;  %v586_v44 = vsel %vm1695_vm12, %v576_v40, %v369_v37  ;;  %v585_v45 = vsel %vm1695_vm12, %v572_v41, %v368_v38 }
  0xc3   : > { %v387_v17 = vpop.permute.xlu1 %386  ;;  %v385_v18 = vpop.permute.xlu0 %384 }
  0xc4   : > { %v394_v2 = vsel %vm1947_vm9, %v387_v17, %v1671_v13  ;;  %v393_v39 = vsel %vm1947_vm9, %v385_v18, %v387_v17  ;;  %vm542_vm9 = vcmask 736256  }
  0xc5   : > { %v595_v48 = vsel %vm588_vm13, %v586_v44, %v394_v2  ;;  %v591_v12 = vsel %vm588_vm13, %v585_v45, %v393_v39 }
  0xc6   : > { %v510_v49 = vpop.permute.xlu2 %509 }
  0xcb   : > { %v1693_v32 = vpop.permute.xlu1 %429 }
  0xcd   : > { %v1379_v3 = vpop.permute.xlu0 %1378 }
  0xce   : > { %v1381_v1 = vunpack.i.h.bf16 %v1379_v3  ;;  %v1380_v43 = vunpack.i.l.bf16 %v1379_v3  ;;  %v535_v10 = vpop.permute.xlu2 %534 }
  0xd0   : > { %v443_v51 = vsel %vm441_vm14, %v1381_v1, %v1693_v32  ;;  %v442_v52 = vsel %vm441_vm14, %v1380_v43, %v1381_v1 }
  0xd1   : > { %v605_v53 = vsel %vm1709_vm15, %v595_v48, %v443_v51  ;;  %v604_v54 = vsel %vm1709_vm15, %v591_v12, %v442_v52 }
  0xd2   : > { %v658_v34 = vunpack.c.l.bf16 %v604_v54  ;;  %v659_v55 = vunpack.c.l.bf16 %v605_v53  ;;  %v661_v56 = vunpack.c.h.bf16 %v604_v54  ;;  %v662_v58 = vunpack.c.h.bf16 %v605_v53 }
  0xd3   : > { %v1730_v59 = vpop.permute.xlu1 %437 }
  0xd4   : > { %v673_v60 = vmul.f32 %v1717_v46, %v658_v34  ;;  %v674_v24 = vmul.f32 %v1719_v47, %v659_v55  ;;  %v676_v61 = vmul.f32 %v1717_v46, %v661_v56  ;;  %v677_v62 = vmul.f32 %v1719_v47, %v662_v58  ;;  %v648_v34 = vld [vmem:[#allocation1 + $0x12] sm:$0xff] }
  0xd5   : > { %v436_v63 = vpop.permute.xlu0 %435 }
  0xd6   : > { %v685_v0 = vpack.c.bf16 %v676_v61, %v673_v60  ;;  %v686_v8 = vpack.c.bf16 %v677_v62, %v674_v24  ;;  %v293_v17 = vpop.permute.xlu2 %292  ;;  %v445_v5 = vsel %vm441_vm14, %v1673_v16, %v436_v63  ;;  %v655_v61 = vpack.i.b16 %v648_v34, %v648_v34 }
  0xd8   : > { %695 = vxpose.binary.xlu1.c.b16.start [1/4] (short) %v686_v8, %v685_v0, 128  ;;  %v657_v0 = vperm.slane %v655_v61, 0 }
  0xda   : > { %v672_v19 = vunpack.c.l.bf16 %v657_v0 }
  0xdb   : > { %v1736_v11 = vpop.permute.xlu1 %468 }
  0xdd   : > { %v467_v14 = vpop.permute.xlu0 %466 }
  0xde   : > { %v473_v22 = vsel %vm472_vm1, %v1675_v21, %v467_v14  ;;  %v474_v23 = vsel %vm472_vm1, %v467_v14, %v1736_v11  ;;  %v446_v21 = vsel %vm441_vm14, %v436_v63, %v1730_v59  ;;  %v366_v38 = vpop.permute.xlu2 %365 }
  0xdf   : > { %v610_v31 = vsel %vm607_vm8, %v445_v5, %v473_v22  ;;  %v614_v33 = vsel %vm607_vm8, %v446_v21, %v474_v23 }
  0xe3   : > { %v1738_v15 = vpop.permute.xlu1 %513 }
  0xe5   : > { %v512_v18 = vpop.permute.xlu0 %511 }
  0xe6   : > { %v518_v27 = vsel %vm517_vm2, %v510_v49, %v512_v18  ;;  %v519_v57 = vsel %vm517_vm2, %v512_v18, %v1738_v15  ;;  %v297_v49 = vsel %vm294_vm0, %v1667_v7, %v293_v17  ;;  %v432_v62 = vpop.permute.xlu2 %431  ;;  %vm1961_vm0 = vcmask 900096  }
  0xe7   : > { %v623_v2 = vsel %vm1747_vm11, %v610_v31, %v518_v27  ;;  %v624_v16 = vsel %vm1747_vm11, %v614_v33, %v519_v57  ;;  %v568_v60 = vsel %vm1677_vm4, %v1590_v4, %v297_v49  ;;  %v370_v25 = vsel %vm1961_vm0, %v1669_v9, %v366_v38 }
  0xe8   : > { %v444_v17 = vsel %vm441_vm14, %v1693_v32, %v432_v62  ;;  %v557_v32 = vshll.u32 %v1665_v6, 16  ;;  %vm746_vm4 = vcmask 228352  }
  0xeb   : > { %v1754_v28 = vpop.permute.xlu1 %538 }
  0xed   : > { %v537_v37 = vpop.permute.xlu0 %536 }
  0xee   : > { %v543_v39 = vsel %vm542_vm9, %v535_v10, %v537_v37  ;;  %v544_v3 = vsel %vm542_vm9, %v537_v37, %v1754_v28  ;;  %v471_v36 = vpop.permute.xlu2 %470 }
  0xef   : > { %v629_v40 = vsel %vm626_vm5, %v623_v2, %v543_v39  ;;  %v633_v41 = vsel %vm626_vm5, %v624_v16, %v544_v3  ;;  %v475_v42 = vsel %vm472_vm1, %v1736_v11, %v471_v36 }
  0xf0   : > { %v642_v1 = vsel %vm1763_vm7, %v629_v40, %v553_v29  ;;  %v643_v43 = vsel %vm1763_vm7, %v633_v41, %v556_v30  ;;  %v559_v30 = vrot.slane %v557_v32, 3 }
  0xf1   : > { %v664_v44 = vunpack.c.l.bf16 %v642_v1  ;;  %v665_v45 = vunpack.c.l.bf16 %v643_v43  ;;  %v667_v48 = vunpack.c.h.bf16 %v642_v1  ;;  %v668_v12 = vunpack.c.h.bf16 %v643_v43 }
  0xf3   : > { %v679_v51 = vmul.f32 %v1717_v46, %v664_v44  ;;  %v680_v52 = vmul.f32 %v1719_v47, %v665_v45  ;;  %v682_v53 = vmul.f32 %v1717_v46, %v667_v48  ;;  %v683_v54 = vmul.f32 %v1719_v47, %v668_v12  ;;  %v1237_v46 = vld [vmem:[%s1943_s2 + $0x8] sm:$0xf]  ;;  %v1301_v47 = vld [vmem:[%s1943_s2 + $0x8] sm:$0x30] }
  0xf4   : > { %v1238_v63 = vor.u32 %v1301_v47, %v1237_v46 }
  0xf5   : > { %v321_v55 = vpop.permute.xlu0 %320  ;;  %v688_v56 = vpack.c.bf16 %v682_v53, %v679_v51  ;;  %v689_v58 = vpack.c.bf16 %v683_v54, %v680_v52 }
  0xf6   : > { %v325_v24 = vsel %vm322_vm3, %v1659_v50, %v321_v55  ;;  %v820_v4 = vsel %vm588_vm13, %v1238_v63, 0  ;;  %v1300_v50 = vld [vmem:[%s1943_s2] sm:$0xff]  ;;  %vm1962_vm3 = vcmask 891904   ;;  %v541_v21 = vpop.permute.xlu2 %540 }
  0xf7   : > { %v580_v7 = vsel %vm569_vm6, %v568_v60, %v325_v24  ;;  %696 = vxpose.binary.xlu1.c.b16.end [2/4] (short) %v689_v58, %v688_v56, 128  ;;  %v545_v37 = vsel %vm542_vm9, %v1754_v28, %v541_v21 }
  0xf8   : > { %828 = vmatpush.bf16.msra.mxu0 %v820_v4  ;;  %1311 = vmatpush.bf16.msra.mxu2 %v820_v4  ;;  %v587_v10 = vsel %vm1695_vm12, %v580_v7, %v370_v25 }
  0xf9   : > { %1312 = vmatpush.bf16.msra.mxu3 %v820_v4  ;;  %1310 = vmatpush.bf16.msra.mxu1 %v820_v4 }
  0xfc   : > { %829 = vmatpush.bf16.msra.mxu0 %v1300_v50  ;;  %1314 = vmatpush.bf16.msra.mxu2 %v1300_v50 }
  0xfd   : > { %v391_v8 = vpop.permute.xlu0 %390  ;;  %1315 = vmatpush.bf16.msra.mxu3 %v1300_v50  ;;  %1313 = vmatpush.bf16.msra.mxu1 %v1300_v50 }
  0xfe   : > { %v395_v14 = vsel %vm1962_vm3, %v1671_v13, %v391_v8 }
  0xff   : > { %v599_v18 = vsel %vm588_vm13, %v587_v10, %v395_v14 }
 0x100   : > { %v606_v20 = vsel %vm1709_vm15, %v599_v18, %v444_v17 }
 0x101   : > { %v660_v9 = vunpack.c.l.bf16 %v606_v20  ;;  %v663_v22 = vunpack.c.h.bf16 %v606_v20 }
 0x103   : > { %v675_v23 = vmul.f32 %v672_v19, %v660_v9  ;;  %v678_v27 = vmul.f32 %v672_v19, %v663_v22 }
 0x105   : > { %v440_v57 = vpop.permute.xlu0 %439  ;;  %v687_v13 = vpack.c.bf16 %v678_v27, %v675_v23 }
 0x106   : > { %v447_v5 = vsel %vm441_vm14, %v1730_v59, %v440_v57 }
 0x107   : > { %719 = vxpose.xlu0.c.b16.start [1/2] (short) %v687_v13, 128  ;;  %v618_v31 = vsel %vm607_vm8, %v447_v5, %v475_v42 }
 0x10d   : > { %v516_v29 = vpop.permute.xlu0 %515 }
 0x10e   : > { %v520_v33 = vsel %vm517_vm2, %v1738_v15, %v516_v29 }
 0x10f   : > { %v625_v6 = vsel %vm1747_vm11, %v618_v31, %v520_v33 }
 0x110   : > { %v637_v38 = vsel %vm626_vm5, %v625_v6, %v545_v37 }
 0x111   : > { %v644_v59 = vsel %vm1763_vm7, %v637_v38, %v559_v30 }
 0x112   : > { %v666_v2 = vunpack.c.l.bf16 %v644_v59  ;;  %v669_v11 = vunpack.c.h.bf16 %v644_v59 }
 0x114   : > { %v681_v16 = vmul.f32 %v672_v19, %v666_v2  ;;  %v684_v39 = vmul.f32 %v672_v19, %v669_v11 }
 0x116   : > { %v690_v3 = vpack.c.bf16 %v684_v39, %v681_v16 }
 0x118   : > { %720 = vxpose.xlu0.c.b16.end [2/2] (short) %v690_v3, 128 }
 0x193   : > { %v703_v40 = vpop.trf.xlu1 }
 0x194   : > { %1239 = vmatmul.msk.bf16.vlgmr.msra.gmra.mxu0 %vm746_vm4, %v703_v40 }
 0x19b   : > { %v704_v15 = vpop.trf.xlu1 }
 0x1a3   : > { %v705_v28 = vpop.trf.xlu1 }
 0x1a4   : > { %1240 = vmatmul.msk.bf16.gmra.mxu0 %vm746_vm4, %v705_v28 }
 0x1ab   : > { %v706_v26 = vpop.trf.xlu1 }
 0x1b3   : > { %v707_v41 = vpop.trf.xlu1 }
 0x1b4   : > { %1241 = vmatmul.msk.bf16.gmra.mxu0 %vm746_vm4, %v707_v41  ;;  %v727_v43 = vpop.trf.xlu0 }
 0x1bb   : > { %v708_v35 = vpop.trf.xlu1 }
 0x1bc   : > { %1249 = vmatmul.msk.bf16.vlgmr.msra.gmra.mxu2 %vm746_vm4, %v708_v35 }
 0x1c3   : > { %v709_v1 = vpop.trf.xlu1 }
 0x1c4   : > { %1242 = vmatmul.msk.bf16.gmra.mxu0 %vm746_vm4, %v709_v1  ;;  %v728_v45 = vpop.trf.xlu0 }
 0x1c5   : > { %1256 = vmatmul.msk.bf16.vlgmr.msra.gmra.mxu3 %vm746_vm4, %v728_v45 }
 0x1cb   : > { %v710_v44 = vpop.trf.xlu1 }
 0x1cc   : > { %1250 = vmatmul.msk.bf16.gmra.mxu2 %vm746_vm4, %v710_v44 }
 0x1d3   : > { %v711_v48 = vpop.trf.xlu1 }
 0x1d4   : > { %1243 = vmatmul.msk.bf16.gmra.mxu0 %vm746_vm4, %v711_v48  ;;  %v729_v49 = vpop.trf.xlu0 }
 0x1d5   : > { %1257 = vmatmul.msk.bf16.gmra.mxu3 %vm746_vm4, %v729_v49 }
 0x1db   : > { %v712_v12 = vpop.trf.xlu1 }
 0x1dc   : > { %1251 = vmatmul.msk.bf16.gmra.mxu2 %vm746_vm4, %v712_v12 }
 0x1e3   : > { %v713_v51 = vpop.trf.xlu1 }
 0x1e4   : > { %1244 = vmatmul.msk.bf16.gmra.mxu0 %vm746_vm4, %v713_v51  ;;  %v730_v53 = vpop.trf.xlu0 }
 0x1e5   : > { %1258 = vmatmul.msk.bf16.gmra.mxu3 %vm746_vm4, %v730_v53 }
 0x1eb   : > { %v714_v52 = vpop.trf.xlu1 }
 0x1ec   : > { %1252 = vmatmul.msk.bf16.gmra.mxu2 %vm746_vm4, %v714_v52 }
 0x1f3   : > { %v715_v54 = vpop.trf.xlu1 }
 0x1f4   : > { %1245 = vmatmul.msk.bf16.gmra.mxu0 %vm746_vm4, %v715_v54  ;;  %v731_v55 = vpop.trf.xlu0 }
 0x1f5   : > { %1259 = vmatmul.msk.bf16.gmra.mxu3 %vm746_vm4, %v731_v55 }
 0x1fb   : > { %v716_v34 = vpop.trf.xlu1 }
 0x1fc   : > { %1253 = vmatmul.msk.bf16.gmra.mxu2 %vm746_vm4, %v716_v34 }
 0x203   : > { %v717_v56 = vpop.trf.xlu1 }
 0x204   : > { %1246 = vmatmul.msk.bf16.vlgmr.msra.gmra.mxu1 %vm746_vm4, %v717_v56  ;;  %v732_v60 = vpop.trf.xlu0 }
 0x205   : > { %1260 = vmatmul.msk.bf16.gmra.mxu3 %vm746_vm4, %v732_v60 }
 0x20b   : > { %v718_v58 = vpop.trf.xlu1 }
 0x20c   : > { %1254 = vmatmul.msk.bf16.gmra.mxu2 %vm746_vm4, %v718_v58 }
 0x211   : > { %v831_v24 = vpop.f32.mrf.mxu0 }
 0x212   : > { %v951_v61 = vmax.f32 %v831_v24, 0.0 }
 0x214   : > { %1247 = vmatmul.msk.bf16.gmra.mxu1 %vm746_vm4, %v704_v15  ;;  %v733_v47 = vpop.trf.xlu0 }
 0x215   : > { %1261 = vmatmul.msk.bf16.gmra.mxu3 %vm746_vm4, %v733_v47 }
 0x219   : > { %v833_v7 = vpop.f32.mrf.mxu0 }
 0x21a   : > { %v952_v62 = vmax.f32 %v833_v7, 0.0 }
 0x21c   : > { %v999_v46 = vadd.f32 %v952_v62, %v951_v61  ;;  %1255 = vmatmul.msk.bf16.gmra.mxu2 %vm746_vm4, %v727_v43 }
 0x221   : > { %v836_v63 = vpop.f32.mrf.mxu0 }
 0x222   : > { %v953_v0 = vmax.f32 %v836_v63, 0.0 }
 0x224   : > { %v1000_v4 = vadd.f32 %v999_v46, %v953_v0  ;;  %1248 = vmatmul.msk.bf16.gmra.mxu1 %vm746_vm4, %v706_v26  ;;  %v734_v50 = vpop.trf.xlu0 }
 0x225   : > { %1262 = vmatmul.msk.bf16.gmra.mxu3 %vm746_vm4, %v734_v50 }
 0x229   : > { %v838_v25 = vpop.f32.mrf.mxu0 }
 0x22a   : > { %v954_v37 = vmax.f32 %v838_v25, 0.0 }
 0x22c   : > { %v1001_v59 = vadd.f32 %v1000_v4, %v954_v37 }
 0x231   : > { %v841_v8 = vpop.f32.mrf.mxu0 }
 0x232   : > { %v955_v38 = vmax.f32 %v841_v8, 0.0 }
 0x234   : > { %v1002_v11 = vadd.f32 %v1001_v59, %v955_v38 }
 0x239   : > { %v843_v14 = vpop.f32.mrf.mxu0 }
 0x23a   : > { %v956_v2 = vmax.f32 %v843_v14, 0.0 }
 0x23c   : > { %v1003_v40 = vadd.f32 %v1002_v11, %v956_v2 }
 0x23f   : > { %v1852_v10 = vpop.f32.mrf.mxu2 }
 0x241   : > { %v846_v18 = vpop.f32.mrf.mxu0 }
 0x242   : > { %v957_v16 = vmax.f32 %v846_v18, 0.0 }
 0x244   : > { %v1004_v41 = vadd.f32 %v1003_v40, %v957_v16 }
 0x247   : > { %v1854_v17 = vpop.f32.mrf.mxu2 }
 0x248   : > { %v1858_v9 = vpop.f32.mrf.mxu3 }
 0x249   : > { %v848_v20 = vpop.f32.mrf.mxu0 }
 0x24a   : > { %v958_v15 = vmax.f32 %v848_v20, 0.0 }
 0x24c   : > { %v1005_v1 = vadd.f32 %v1004_v41, %v958_v15 }
 0x24f   : > { %v1856_v19 = vpop.f32.mrf.mxu2 }
 0x250   : > { %v1862_v23 = vpop.f32.mrf.mxu3 }
 0x251   : > { %v851_v36 = vpop.f32.mrf.mxu0 }
 0x252   : > { %v959_v35 = vmax.f32 %v851_v36, 0.0  ;;  %v971_v36 = vmax.f32 %v1852_v10, 0.0 }
 0x254   : > { %v1006_v44 = vadd.f32 %v1005_v1, %v959_v35  ;;  %v1308_v35 = vld [vmem:[#allocation2 + $0x30] sm:$0xff] }
 0x257   : > { %v1860_v22 = vpop.f32.mrf.mxu2 }
 0x258   : > { %v1866_v13 = vpop.f32.mrf.mxu3  ;;  %v974_v59 = vmax.f32 %v1860_v22, 0.0 }
 0x259   : > { %v853_v57 = vpop.f32.mrf.mxu0 }
 0x25a   : > { %v960_v43 = vmax.f32 %v853_v57, 0.0 }
 0x25c   : > { %v1007_v48 = vadd.f32 %v1006_v44, %v960_v43 }
 0x25f   : > { %v1864_v27 = vpop.f32.mrf.mxu2 }
 0x260   : > { %v1870_v21 = vpop.f32.mrf.mxu3  ;;  %v975_v11 = vmax.f32 %v1864_v27, 0.0  ;;  %v1307_v27 = vld [vmem:[#allocation2 + $0x28] sm:$0xff] }
 0x261   : > { %v856_v5 = vpop.f32.mrf.mxu0 }
 0x262   : > { %v961_v45 = vmax.f32 %v856_v5, 0.0 }
 0x264   : > { %v1008_v53 = vadd.f32 %v1007_v48, %v961_v45 }
 0x267   : > { %v1868_v32 = vpop.f32.mrf.mxu2 }
 0x268   : > { %v1874_v31 = vpop.f32.mrf.mxu3  ;;  %v976_v40 = vmax.f32 %v1868_v32, 0.0 }
 0x269   : > { %v858_v30 = vpop.f32.mrf.mxu0 }
 0x26a   : > { %v962_v12 = vmax.f32 %v858_v30, 0.0 }
 0x26c   : > { %v1009_v55 = vadd.f32 %v1008_v53, %v962_v12 }
 0x26f   : > { %v1872_v42 = vpop.f32.mrf.mxu2 }
 0x270   : > { %v1878_v3 = vpop.f32.mrf.mxu3 }
 0x271   : > { %v861_v39 = vpop.f32.mrf.mxu0 }
 0x272   : > { %v963_v54 = vmax.f32 %v861_v39, 0.0  ;;  %v1309_v39 = vld [vmem:[#allocation2 + $0x38] sm:$0xff] }
 0x273   : > { %1120 = vmatpush.bf16.msrb.mxu1 %v1309_v39 }
 0x274   : > { %v1010_v58 = vadd.f32 %v1009_v55, %v963_v54 }
 0x277   : > { %v1876_v33 = vpop.f32.mrf.mxu2  ;;  %1121 = vmatpush.bf16.msrb.mxu1 %v1308_v35 }
 0x278   : > { %v1882_v52 = vpop.f32.mrf.mxu3 }
 0x279   : > { %v863_v49 = vpop.f32.mrf.mxu0 }
 0x27a   : > { %v964_v56 = vmax.f32 %v863_v49, 0.0  ;;  %v1306_v49 = vld [vmem:[#allocation2 + $0x20] sm:$0xff] }
 0x27b   : > { %1122 = vmatpush.bf16.msrb.mxu1 %v1307_v27 }
 0x27c   : > { %v1011_v24 = vadd.f32 %v1010_v58, %v964_v56 }
 0x27f   : > { %v1880_v28 = vpop.f32.mrf.mxu2  ;;  %1123 = vmatpush.bf16.msrb.mxu1 %v1306_v49 }
 0x280   : > { %v1884_v47 = vpop.f32.mrf.mxu3  ;;  %v979_v22 = vmax.f32 %v1880_v28, 0.0  ;;  %v985_v28 = vmax.f32 %v1858_v9, 0.0  ;;  %v990_v9 = vmax.f32 %v1878_v3, 0.0 }
 0x281   : > { %v866_v29 = vpop.f32.mrf.mxu1 }
 0x282   : > { %v965_v60 = vmax.f32 %v866_v29, 0.0  ;;  %v972_v29 = vmax.f32 %v1854_v17, 0.0 }
 0x284   : > { %v1012_v62 = vadd.f32 %v1011_v24, %v965_v60  ;;  %v986_v24 = vmax.f32 %v1862_v23, 0.0  ;;  %v991_v23 = vmax.f32 %v1882_v52, 0.0 }
 0x287   : > { %v903_v34 = vpop.f32.mrf.mxu2 }
 0x288   : > { %v1887_v5 = vpop.f32.mrf.mxu3  ;;  %v980_v44 = vmax.f32 %v903_v34, 0.0  ;;  %v1304_v34 = vld [vmem:[#allocation2 + $0x10] sm:$0xff] }
 0x289   : > { %v868_v6 = vpop.f32.mrf.mxu1 }
 0x28a   : > { %v966_v7 = vmax.f32 %v868_v6, 0.0  ;;  %v973_v6 = vmax.f32 %v1856_v19, 0.0  ;;  %v978_v19 = vmax.f32 %v1876_v33, 0.0  ;;  %v1305_v33 = vld [vmem:[#allocation2 + $0x18] sm:$0xff] }
 0x28b   : > { %1124 = vmatpush.bf16.msrb.mxu1 %v1305_v33 }
 0x28c   : > { %v1013_v63 = vadd.f32 %v1012_v62, %v966_v7  ;;  %v987_v62 = vmax.f32 %v1866_v13, 0.0  ;;  %v992_v13 = vmax.f32 %v1884_v47, 0.0 }
 0x28f   : > { %v906_v4 = vpop.f32.mrf.mxu2  ;;  %1125 = vmatpush.bf16.msrb.mxu1 %v1304_v34 }
 0x290   : > { %v938_v15 = vpop.f32.mrf.mxu3  ;;  %v981_v32 = vmax.f32 %v906_v4, 0.0 }
 0x291   : > { %v871_v26 = vpop.f32.mrf.mxu1 }
 0x292   : > { %v967_v46 = vmax.f32 %v871_v26, 0.0  ;;  %v977_v26 = vmax.f32 %v1872_v42, 0.0 }
 0x294   : > { %v1014_v50 = vadd.f32 %v1013_v63, %v967_v46  ;;  %v1303_v63 = vld [vmem:[#allocation2 + $0x8] sm:$0xff] }
 0x295   : > { %1126 = vmatpush.bf16.msrb.mxu1 %v1303_v63 }
 0x297   : > { %v908_v37 = vpop.f32.mrf.mxu2 }
 0x298   : > { %v941_v12 = vpop.f32.mrf.mxu3 }
 0x299   : > { %v873_v51 = vpop.f32.mrf.mxu1 }
 0x29a   : > { %v968_v0 = vmax.f32 %v873_v51, 0.0  ;;  %v982_v51 = vmax.f32 %v908_v37, 0.0 }
 0x29c   : > { %v1015_v8 = vadd.f32 %v1014_v50, %v968_v0  ;;  %v988_v0 = vmax.f32 %v1870_v21, 0.0  ;;  %v1302_v50 = vld [vmem:[#allocation2] sm:$0xff]  ;;  %v993_v21 = vmax.f32 %v1887_v5, 0.0 }
 0x29d   : > { %1127 = vmatpush.bf16.msrb.mxu1 %v1302_v50 }
 0x29f   : > { %v911_v41 = vpop.f32.mrf.mxu2 }
 0x2a0   : > { %v983_v54 = vmax.f32 %v911_v41, 0.0  ;;  %v1071_v41 = vld [vmem:[%s1945_s4] sm:$0x1] }
 0x2a1   : > { %v876_v61 = vpop.f32.mrf.mxu1 }
 0x2a2   : > { %v969_v25 = vmax.f32 %v876_v61, 0.0  ;;  %v943_v61 = vpop.f32.mrf.mxu3 }
 0x2a4   : > { %v1016_v18 = vadd.f32 %v1015_v8, %v969_v25  ;;  %v989_v25 = vmax.f32 %v1874_v31, 0.0 }
 0x2a7   : > { %v913_v53 = vpop.f32.mrf.mxu2 }
 0x2a8   : > { %v984_v56 = vmax.f32 %v913_v53, 0.0 }
 0x2a9   : > { %v878_v14 = vpop.f32.mrf.mxu1 }
 0x2aa   : > { %v970_v20 = vmax.f32 %v878_v14, 0.0 }
 0x2ac   : > { %v1017_v57 = vadd.f32 %v1016_v18, %v970_v20  ;;  %v946_v20 = vpop.f32.mrf.mxu3 }
 0x2ae   : > { %v1018_v30 = vadd.f32 %v1017_v57, %v971_v36 }
 0x2b0   : > { %v1019_v38 = vadd.f32 %v1018_v30, %v972_v29  ;;  %v994_v30 = vmax.f32 %v938_v15, 0.0 }
 0x2b2   : > { %v1020_v2 = vadd.f32 %v1019_v38, %v973_v6  ;;  %v995_v6 = vmax.f32 %v941_v12, 0.0  ;;  %v996_v38 = vmax.f32 %v943_v61, 0.0 }
 0x2b4   : > { %v1021_v16 = vadd.f32 %v1020_v2, %v974_v59  ;;  %v948_v3 = vpop.f32.mrf.mxu3  ;;  %v997_v2 = vmax.f32 %v946_v20, 0.0 }
 0x2b6   : > { %v1022_v10 = vadd.f32 %v1021_v16, %v975_v11  ;;  %v998_v11 = vmax.f32 %v948_v3, 0.0 }
 0x2b8   : > { %v1023_v17 = vadd.f32 %v1022_v10, %v976_v40 }
 0x2ba   : > { %v1024_v1 = vadd.f32 %v1023_v17, %v977_v26 }
 0x2bc   : > { %v1025_v43 = vadd.f32 %v1024_v1, %v978_v19 }
 0x2be   : > { %v1026_v45 = vadd.f32 %v1025_v43, %v979_v22 }
 0x2c0   : > { %v1027_v48 = vadd.f32 %v1026_v45, %v980_v44 }
 0x2c2   : > { %v1028_v42 = vadd.f32 %v1027_v48, %v981_v32 }
 0x2c4   : > { %v1029_v55 = vadd.f32 %v1028_v42, %v982_v51 }
 0x2c6   : > { %v1030_v58 = vadd.f32 %v1029_v55, %v983_v54 }
 0x2c8   : > { %v1031_v60 = vadd.f32 %v1030_v58, %v984_v56 }
 0x2ca   : > { %v1032_v7 = vadd.f32 %v1031_v60, %v985_v28 }
 0x2cc   : > { %v1033_v46 = vadd.f32 %v1032_v7, %v986_v24 }
 0x2ce   : > { %v1034_v4 = vadd.f32 %v1033_v46, %v987_v62 }
 0x2d0   : > { %v1035_v8 = vadd.f32 %v1034_v4, %v988_v0 }
 0x2d2   : > { %v1036_v14 = vadd.f32 %v1035_v8, %v989_v25 }
 0x2d4   : > { %v1037_v18 = vadd.f32 %v1036_v14, %v990_v9 }
 0x2d6   : > { %v1038_v36 = vadd.f32 %v1037_v18, %v991_v23 }
 0x2d8   : > { %v1039_v57 = vadd.f32 %v1038_v36, %v992_v13 }
 0x2da   : > { %v1040_v29 = vadd.f32 %v1039_v57, %v993_v21 }
 0x2dc   : > { %v1041_v37 = vadd.f32 %v1040_v29, %v994_v30 }
 0x2de   : > { %v1042_v31 = vadd.f32 %v1041_v37, %v995_v6 }
 0x2e0   : > { %v1043_v59 = vadd.f32 %v1042_v31, %v996_v38 }
 0x2e2   : > { %v1044_v52 = vadd.f32 %v1043_v59, %v997_v2 }
 0x2e4   : > { %v1045_v16 = vadd.f32 %v1044_v52, %v998_v11 }
 0x2e6   : > { %v1047_v39 = vrot.slane %v1045_v16, 4 }
 0x2e8   : > { %v1048_v47 = vadd.f32 %v1047_v39, %v1045_v16 }
 0x2ea   : > { %v1049_v40 = vrot.slane %v1048_v47, 2 }
 0x2ec   : > { %v1050_v10 = vadd.f32 %v1049_v40, %v1048_v47 }
 0x2ee   : > { %v1051_v26 = vrot.slane %v1050_v10, 1 }
 0x2f0   : > { %v1052_v5 = vadd.f32 %v1051_v26, %v1050_v10 }
 0x2f2   : > { %v1053_v17 = vmul.f32 0.00390625, %v1052_v5 }
 0x2f4   : > { %v1054_v15 = vpack.c.bf16 %v1053_v17, %v1053_v17 }
 0x2f6   : > { %1128 = vmatmul.bf16.vlgmr.msrb.gmra.mxu1 %v1054_v15 }
 0x373   : > { %v1129_v35 = vpop.f32.mrf.mxu1 }
 0x374   : > { %v1130_v19 = vadd.f32 %v1129_v35, %v1071_v41 }
 0x376   : > { %v1133_v1 = vperm.slane %v1130_v19, 0 }
 0x378   : > { %1134 = vst [vmem:[%s234_s9] sm:$0xff] %v1133_v1 }
 0x379   : > { %1439 = shalt.err (!%p1436_p8)
}
 0x37a   : > { %1320 = dma.vmem_to_hbm [thread:$0]  (%p1559_p5), %s1149_s10, 128, %s1151_s11, %s1136_s12  }
 0x37b   : > { %v1131_v22 = vpop.f32.mrf.mxu1 }
 0x37c PF: > { %p1332_p9 = scmp.ge.s32.totalorder %s1478_s21, 2  ;;  %s1162_s17 = sand.u32 1, %s1466_s18  }
 0x37d   : > { %s1163_s26 = scalar_lea.sflag [#allocation4], %s1162_s17 }
 0x37e   : > { %p1327_p10 = pnand %p1332_p9, %p1563_p6 }
 0x380   : > { %p1328_p11 = pneg %p1327_p10 }
 0x382   : > { %1461 = dma.done.wait (%p1328_p11), %s1163_s26, 128  }
 0x383   : > { %1463 = vsyncadd (%p1328_p11), %s1163_s26, 4294967168  ;;  %p16_p12 = scmp.ge.s32.totalorder %s1546_s24, 4   ;;  %s1963_s18 = smov %s1470_s19 }
 0x384   : > { %s1964_s19 = smov %s1474_s20  ;;  %s1965_s20 = smov %s1557_s27 }
 0x385   : > { %s1966_s21 = smov %s1546_s24  ;;  %18 = sbr.rel (!%p16_p12) target bundleno = 4 (0x4), region = 82 }
 0x38a   :  { %1169 = vsyncpa [#allocation3], 1 }
 0x38b   :  { %1171 = vsyncpa [#allocation3 + $0x1], 1 }
 0x38c   :  { %1172 = vsyncpa [#allocation4], 1 }
 0x38d   :  { %1174 = vsyncpa [#allocation4 + $0x1], 1 }

</bundles_post_ra>
